<compile_context>
chip_gen: v6e
topology: v6e:2x2x1
jax: 0.10.0
libtpu: 0.0.40
codegen_flags: <defaults>
</compile_context>

<pallas_src>
import functools
import math

import jax
import jax.numpy as jnp
from jax.experimental import pallas as pl
from jax.experimental.pallas import tpu as pltpu


_NEG_BIG = -1e30            # finite mask sentinel: avoids inf - inf -> NaN
_FAST_PATH_MAX_SEQ = 512    # padded seq lengths <= this use the single-block path


def _round_up(x, m):
    return (x + m - 1) // m * m


def _vmem_budget(need_bytes):
    # 1.5x headroom over the estimated working set, clamped to a range that is
    # safe on every generation (v7x has 64 MiB physical VMEM per TensorCore).
    return int(min(max(1.5 * need_bytes, 32 * 1024 * 1024), 48 * 1024 * 1024))


# --------------------------------------------------------------------------
# Kernel 1: fused Q/K/V projection (bias folded, Q pre-scaled by 1/sqrt(d)).
# --------------------------------------------------------------------------
def _qkv_proj_kernel(x_ref, w_ref, q_ref, k_ref, v_ref, *, d_pad):
    x = x_ref[0]                                                  # (T, d_aug) bf16
    qkv = jnp.dot(x, w_ref[...], preferred_element_type=jnp.float32)  # (T, 3*d_pad) f32
    q_ref[0] = qkv[:, :d_pad].astype(q_ref.dtype)
    k_ref[0] = qkv[:, d_pad:2 * d_pad].astype(k_ref.dtype)
    v_ref[0] = qkv[:, 2 * d_pad:].astype(v_ref.dtype)


# --------------------------------------------------------------------------
# Kernel 2a: small-S fast path — whole row of keys in one block, plain softmax.
# --------------------------------------------------------------------------
def _attn_single_block_kernel(q_ref, k_ref, v_ref, o_ref, *, seq_len, needs_mask):
    q = q_ref[0]                                                  # (S_p, d_pad) bf16
    k = k_ref[0]
    # scores = q @ k^T (scale already folded into q); contract last dims (no XLU transpose).
    s = jax.lax.dot_general(q, k, (((1,), (1,)), ((), ())),
                            preferred_element_type=jnp.float32)   # (S_p, S_p) f32
    if needs_mask:
        kv_idx = jax.lax.broadcasted_iota(jnp.int32, s.shape, 1)
        s = jnp.where(kv_idx < seq_len, s, _NEG_BIG)
    m = jnp.max(s, axis=-1, keepdims=True)
    p = jnp.exp(s - m)
    l = jnp.sum(p, axis=-1, keepdims=True)
    out = jnp.dot(p.astype(jnp.bfloat16), v_ref[0],
                  preferred_element_type=jnp.float32)
    o_ref[0] = (out * pl.reciprocal(l, approx=True)).astype(o_ref.dtype)


# --------------------------------------------------------------------------
# Kernel 2b: flash path — online softmax over kv blocks (innermost grid axis).
# --------------------------------------------------------------------------
def _flash_attn_kernel(q_ref, k_ref, v_ref, o_ref, m_sc, l_sc, acc_sc,
                       *, seq_len, tkv, needs_mask):
    ki = pl.program_id(2)

    @pl.when(ki == 0)
    def _init():
        m_sc[...] = jnp.full_like(m_sc, _NEG_BIG)
        l_sc[...] = jnp.zeros_like(l_sc)
        acc_sc[...] = jnp.zeros_like(acc_sc)

    q = q_ref[0]                                                  # (tq, d_pad) bf16, pre-scaled
    k = k_ref[0]                                                  # (tkv, d_pad) bf16
    s = jax.lax.dot_general(q, k, (((1,), (1,)), ((), ())),
                            preferred_element_type=jnp.float32)   # (tq, tkv) f32

    if needs_mask:
        kv_idx = ki * tkv + jax.lax.broadcasted_iota(jnp.int32, s.shape, 1)
        s = jnp.where(kv_idx < seq_len, s, _NEG_BIG)

    # Online softmax update (all elementwise math in f32; finite sentinel keeps
    # m_prev - m_new finite even for fully-masked blocks, which cannot occur
    # with the current padding scheme anyway).
    m_prev = m_sc[...]
    m_new = jnp.maximum(m_prev, jnp.max(s, axis=-1, keepdims=True))
    alpha = jnp.exp(m_prev - m_new)
    p = jnp.exp(s - m_new)
    l_sc[...] = alpha * l_sc[...] + jnp.sum(p, axis=-1, keepdims=True)
    acc_sc[...] = alpha * acc_sc[...] + jnp.dot(
        p.astype(jnp.bfloat16), v_ref[0], preferred_element_type=jnp.float32)
    m_sc[...] = m_new

    @pl.when(ki == pl.num_programs(2) - 1)
    def _finalize():
        inv_l = pl.reciprocal(l_sc[...], approx=True)
        o_ref[0] = (acc_sc[...] * inv_l).astype(o_ref.dtype)


# --------------------------------------------------------------------------
# Wrapper
# --------------------------------------------------------------------------
def attention_pallas(x, wq, wk, wv, bq, bk, bv):
    """x: (B, S, d_in); weights pre-transposed as (d_in, d_out); biases (1, d_out)."""
    B, S, d_in = x.shape
    d_out = wq.shape[1]
    out_dtype = x.dtype

    d_pad = _round_up(d_out, 128)
    d_aug = _round_up(d_in + 1, 128)               # +1 ones column (folds the bias add)
    inv_sqrt_d = 1.0 / math.sqrt(d_out)

    S8 = _round_up(S, 8)
    if S8 <= _FAST_PATH_MAX_SEQ:
        tile = S8                                  # whole sequence in one block
    else:
        tile = 256                                 # fills the 256-wide v6e/v7x MXU
    S_p = _round_up(S, tile)
    needs_mask = S_p != S

    # ---- activations: zero-pad + ones column at index d_in (the bias "input") ----
    x_p = jnp.zeros((B, S_p, d_aug), jnp.float32)
    x_p = x_p.at[:, :S, :d_in].set(x.astype(jnp.float32))
    x_p = x_p.at[:, :, d_in].set(1.0)
    x_p = x_p.astype(jnp.bfloat16)

    # ---- fused lane-dense (Wq|Wk|Wv) slab; bias row at d_in; Q columns pre-scaled ----
    def pack(w, b, scale):
        wp = jnp.zeros((d_aug, d_pad), jnp.float32)
        wp = wp.at[:d_in, :d_out].set(w.astype(jnp.float32) * scale)
        wp = wp.at[d_in, :d_out].set(b.reshape(-1).astype(jnp.float32) * scale)
        return wp

    w_qkv = jnp.concatenate(
        [pack(wq, bq, inv_sqrt_d), pack(wk, bk, 1.0), pack(wv, bv, 1.0)],
        axis=1).astype(jnp.bfloat16)               # (d_aug, 3*d_pad)

    # ---------------- kernel 1: QKV projection (single pass over x) ----------------
    proj_need = (2 * tile * d_aug * 2              # x tiles (double-buffered, bf16)
                 + 2 * d_aug * 3 * d_pad * 2       # weight slab (2 buffers worst case)
                 + 3 * 2 * tile * d_pad * 2        # q/k/v output tiles
                 + tile * 3 * d_pad * 4)           # f32 matmul result
    q, k, v = pl.pallas_call(
        functools.partial(_qkv_proj_kernel, d_pad=d_pad),
        out_shape=tuple(jax.ShapeDtypeStruct((B, S_p, d_pad), jnp.bfloat16)
                        for _ in range(3)),
        grid_spec=pltpu.PrefetchScalarGridSpec(
            num_scalar_prefetch=0,
            grid=(B, S_p // tile),
            in_specs=[
                pl.BlockSpec((1, tile, d_aug), lambda b, i: (b, i, 0)),
                pl.BlockSpec((d_aug, 3 * d_pad), lambda b, i: (0, 0)),
            ],
            out_specs=tuple(pl.BlockSpec((1, tile, d_pad), lambda b, i: (b, i, 0))
                            for _ in range(3))),
        compiler_params=pltpu.CompilerParams(
            dimension_semantics=("parallel", "parallel"),
            vmem_limit_bytes=_vmem_budget(proj_need)),
    )(x_p, w_qkv)

    # ---------------- kernel 2: scaled-dot-product attention ----------------
    if S_p == tile:
        # Fast path: one block per batch row, plain softmax.
        attn_need = (3 * 2 * S_p * d_pad * 2 + 2 * S_p * d_pad * 4
                     + 4 * S_p * S_p * 4)
        out = pl.pallas_call(
            functools.partial(_attn_single_block_kernel,
                              seq_len=S, needs_mask=needs_mask),
            out_shape=jax.ShapeDtypeStruct((B, S_p, d_pad), out_dtype),
            grid_spec=pltpu.PrefetchScalarGridSpec(
                num_scalar_prefetch=0,
                grid=(B,),
                in_specs=[pl.BlockSpec((1, S_p, d_pad), lambda b: (b, 0, 0))
                          for _ in range(3)],
                out_specs=pl.BlockSpec((1, S_p, d_pad), lambda b: (b, 0, 0))),
            compiler_params=pltpu.CompilerParams(
                dimension_semantics=("parallel",),
                vmem_limit_bytes=_vmem_budget(attn_need)),
        )(q, k, v)
    else:
        attn_need = (3 * 2 * tile * d_pad * 2 + 2 * tile * d_pad * 4
                     + tile * d_pad * 4 + 4 * tile * tile * 4)
        out = pl.pallas_call(
            functools.partial(_flash_attn_kernel,
                              seq_len=S, tkv=tile, needs_mask=needs_mask),
            out_shape=jax.ShapeDtypeStruct((B, S_p, d_pad), out_dtype),
            grid_spec=pltpu.PrefetchScalarGridSpec(
                num_scalar_prefetch=0,
                grid=(B, S_p // tile, S_p // tile),
                in_specs=[
                    pl.BlockSpec((1, tile, d_pad), lambda b, qi, ki: (b, qi, 0)),
                    pl.BlockSpec((1, tile, d_pad), lambda b, qi, ki: (b, ki, 0)),
                    pl.BlockSpec((1, tile, d_pad), lambda b, qi, ki: (b, ki, 0)),
                ],
                out_specs=pl.BlockSpec((1, tile, d_pad), lambda b, qi, ki: (b, qi, 0)),
                scratch_shapes=[
                    pltpu.VMEM((tile, 1), jnp.float32),       # running max
                    pltpu.VMEM((tile, 1), jnp.float32),       # running denominator
                    pltpu.VMEM((tile, d_pad), jnp.float32),   # output accumulator
                ]),
            compiler_params=pltpu.CompilerParams(
                dimension_semantics=("parallel", "parallel", "arbitrary"),
                vmem_limit_bytes=_vmem_budget(attn_need)),
        )(q, k, v)

    # Drop seq / feature padding.
    return out[:, :S, :d_out]


def attention_ref(x, wq, wk, wv, bq, bk, bv):
    d_out = wq.shape[1]
    q = x @ wq + bq
    k = x @ wk + bk
    v = x @ wv + bv
    scores = jnp.einsum("bqd,bkd->bqk", q, k) / math.sqrt(d_out)
    attn = jax.nn.softmax(scores, axis=-1)
    return jnp.einsum("bqk,bkd->bqd", attn, v)


if __name__ == "__main__":
    def init_params(key, d_in, d_out):
        kq, kk, kv, kbq, kbk, kbv = jax.random.split(key, 6)
        scale = 1.0 / math.sqrt(d_in)
        u = lambda k, shape: jax.random.uniform(
            k, shape, minval=-scale, maxval=scale, dtype=jnp.float32)
        return (u(kq, (d_in, d_out)), u(kk, (d_in, d_out)), u(kv, (d_in, d_out)),
                u(kbq, (1, d_out)), u(kbk, (1, d_out)), u(kbv, (1, d_out)))

    key = jax.random.PRNGKey(0)
    k_small, k_big, kp = jax.random.split(key, 3)

    # Primary (small) test: B=2, S=8, d_in=d_out=32  -> single-block fast path.
    B, S, d_in, d_out = 2, 8, 32, 32
    wq, wk, wv, bq, bk, bv = init_params(kp, d_in, d_out)
    x = jax.random.normal(k_small, (B, S, d_in), dtype=jnp.float32)

    out = jax.block_until_ready(attention_pallas(x, wq, wk, wv, bq, bk, bv))
    ref = attention_ref(x, wq, wk, wv, bq, bk, bv)
    assert out.shape == (B, S, d_out)
    # bf16 MXU operands -> loosened tolerance vs the f32 reference.
    assert jnp.allclose(out, ref, atol=2e-2, rtol=2e-2), "small-S mismatch vs reference"

    # Secondary test exercising the flash (online-softmax) path + padding mask.
    S2 = 640
    x2 = jax.random.normal(k_big, (1, S2, d_in), dtype=jnp.float32)
    out2 = jax.block_until_ready(attention_pallas(x2, wq, wk, wv, bq, bk, bv))
    ref2 = attention_ref(x2, wq, wk, wv, bq, bk, bv)
    assert out2.shape == (1, S2, d_out)
    assert jnp.allclose(out2, ref2, atol=2e-2, rtol=2e-2), "flash-path mismatch vs reference"

    print("KERNEL_OK")
</pallas_src>

<mosaic_0001>
module attributes {stable_mosaic.version = 11 : i64} {
  func.func @_qkv_proj_kernel(%arg0: i32, %arg1: i32, %arg2: memref<1x8x128xbf16, #tpu.memory_space<vmem>>, %arg3: memref<128x384xbf16, #tpu.memory_space<vmem>>, %arg4: memref<1x8x128xbf16, #tpu.memory_space<vmem>>, %arg5: memref<1x8x128xbf16, #tpu.memory_space<vmem>>, %arg6: memref<1x8x128xbf16, #tpu.memory_space<vmem>>) attributes {dimension_semantics = [#tpu.dimension_semantics<parallel>, #tpu.dimension_semantics<parallel>], iteration_bounds = array<i64: 2, 1>, scalar_prefetch = 0 : i64, scratch_operands = 0 : i64, tpu.core_type = #tpu.core_type<tc>, window_params = [{transform_indices = @transform_0, window_bounds = array<i64: 1, 8, 128>}, {pipeline_mode = #tpu.pipeline_mode<synchronous>, transform_indices = @transform_1, window_bounds = array<i64: 128, 384>}, {transform_indices = @transform_2, window_bounds = array<i64: 1, 8, 128>}, {transform_indices = @transform_3, window_bounds = array<i64: 1, 8, 128>}, {transform_indices = @transform_4, window_bounds = array<i64: 1, 8, 128>}]} {
    %c0 = arith.constant 0 : index
    %c0_0 = arith.constant 0 : index
    %c0_1 = arith.constant 0 : index
    %0 = vector.load %arg2[%c0, %c0_0, %c0_1] : memref<1x8x128xbf16, #tpu.memory_space<vmem>>, vector<1x8x128xbf16>
    %1 = vector.shape_cast %0 : vector<1x8x128xbf16> to vector<8x128xbf16>
    %c0_2 = arith.constant 0 : index
    %c0_3 = arith.constant 0 : index
    %2 = vector.load %arg3[%c0_2, %c0_3] : memref<128x384xbf16, #tpu.memory_space<vmem>>, vector<128x384xbf16>
    %cst = arith.constant dense<0.000000e+00> : vector<8x384xf32>
    %3 = tpu.matmul %1, %2, %cst {dimension_numbers = #tpu.dot_dimension_numbers<[1], [0], [0], [1], [0, 0, 1, 1], [], []>} : vector<8x128xbf16>, vector<128x384xbf16>, vector<8x384xf32> -> vector<8x384xf32>
    %4 = vector.extract_strided_slice %3 {offsets = [0, 0], sizes = [8, 128], strides = [1, 1]} : vector<8x384xf32> to vector<8x128xf32>
    %5 = arith.truncf %4 : vector<8x128xf32> to vector<8x128xbf16>
    %c0_4 = arith.constant 0 : index
    %c0_5 = arith.constant 0 : index
    %c0_6 = arith.constant 0 : index
    %6 = vector.load %arg4[%c0_4, %c0_5, %c0_6] : memref<1x8x128xbf16, #tpu.memory_space<vmem>>, vector<1x8x128xbf16>
    %7 = vector.shape_cast %6 : vector<1x8x128xbf16> to vector<8x128xbf16>
    %8 = vector.shape_cast %5 : vector<8x128xbf16> to vector<1x8x128xbf16>
    tpu.vector_store %arg4[%c0_4, %c0_5, %c0_6], %8 {strides = array<i32>} : memref<1x8x128xbf16, #tpu.memory_space<vmem>>, vector<1x8x128xbf16>,
    %9 = vector.extract_strided_slice %3 {offsets = [0, 128], sizes = [8, 128], strides = [1, 1]} : vector<8x384xf32> to vector<8x128xf32>
    %10 = arith.truncf %9 : vector<8x128xf32> to vector<8x128xbf16>
    %c0_7 = arith.constant 0 : index
    %c0_8 = arith.constant 0 : index
    %c0_9 = arith.constant 0 : index
    %11 = vector.load %arg5[%c0_7, %c0_8, %c0_9] : memref<1x8x128xbf16, #tpu.memory_space<vmem>>, vector<1x8x128xbf16>
    %12 = vector.shape_cast %11 : vector<1x8x128xbf16> to vector<8x128xbf16>
    %13 = vector.shape_cast %10 : vector<8x128xbf16> to vector<1x8x128xbf16>
    tpu.vector_store %arg5[%c0_7, %c0_8, %c0_9], %13 {strides = array<i32>} : memref<1x8x128xbf16, #tpu.memory_space<vmem>>, vector<1x8x128xbf16>,
    %14 = vector.extract_strided_slice %3 {offsets = [0, 256], sizes = [8, 128], strides = [1, 1]} : vector<8x384xf32> to vector<8x128xf32>
    %15 = arith.truncf %14 : vector<8x128xf32> to vector<8x128xbf16>
    %c0_10 = arith.constant 0 : index
    %c0_11 = arith.constant 0 : index
    %c0_12 = arith.constant 0 : index
    %16 = vector.load %arg6[%c0_10, %c0_11, %c0_12] : memref<1x8x128xbf16, #tpu.memory_space<vmem>>, vector<1x8x128xbf16>
    %17 = vector.shape_cast %16 : vector<1x8x128xbf16> to vector<8x128xbf16>
    %18 = vector.shape_cast %15 : vector<8x128xbf16> to vector<1x8x128xbf16>
    tpu.vector_store %arg6[%c0_10, %c0_11, %c0_12], %18 {strides = array<i32>} : memref<1x8x128xbf16, #tpu.memory_space<vmem>>, vector<1x8x128xbf16>,
    return
  }
  func.func @transform_0(%arg0: i32, %arg1: i32) -> (i32, i32, i32) {
    %c0_i32 = arith.constant 0 : i32
    %c0_i32_0 = arith.constant 0 : i32
    return %arg0, %arg1, %c0_i32 : i32, i32, i32
  }
  func.func @transform_1(%arg0: i32, %arg1: i32) -> (i32, i32) {
    %c0_i32 = arith.constant 0 : i32
    %c0_i32_0 = arith.constant 0 : i32
    %c0_i32_1 = arith.constant 0 : i32
    return %c0_i32, %c0_i32_0 : i32, i32
  }
  func.func @transform_2(%arg0: i32, %arg1: i32) -> (i32, i32, i32) {
    %c0_i32 = arith.constant 0 : i32
    %c0_i32_0 = arith.constant 0 : i32
    return %arg0, %arg1, %c0_i32 : i32, i32, i32
  }
  func.func @transform_3(%arg0: i32, %arg1: i32) -> (i32, i32, i32) {
    %c0_i32 = arith.constant 0 : i32
    %c0_i32_0 = arith.constant 0 : i32
    return %arg0, %arg1, %c0_i32 : i32, i32, i32
  }
  func.func @transform_4(%arg0: i32, %arg1: i32) -> (i32, i32, i32) {
    %c0_i32 = arith.constant 0 : i32
    %c0_i32_0 = arith.constant 0 : i32
    return %arg0, %arg1, %c0_i32 : i32, i32, i32
  }
}

</mosaic_0001>

<bundles_post_ra>
// kernel: tpu_custom_call.1
= control target key start
LH: loop header
LB: loop body
LE: loop exit
PB: predicated region body
PF: predicated region fallthrough
CT: control target
= control target key end

     0   :  { %s1399_s0 = inlined_call_operand.hbm [shape: bf16[2,8,128], index: 0, kind: input, shape index: {}]   ;;  %s1400_s1 = inlined_call_operand.hbm [shape: bf16[128,384], index: 1, kind: input, shape index: {}]   ;;  %s1401_s2 = inlined_call_operand.hbm [shape: bf16[2,8,128], index: 2, kind: output, shape index: {0}]   ;;  %s1402_s3 = inlined_call_operand.hbm [shape: bf16[2,8,128], index: 3, kind: output, shape index: {1}]   ;;  %s1403_s4 = inlined_call_operand.hbm [shape: bf16[2,8,128], index: 4, kind: output, shape index: {2}]  }
   0x1   :  { %1407 = sst [smem:[#allocation15_spill]] %s1400_s1 }
   0x2   :  { %10 = vsyncpa [#allocation3], 0 }
   0x3   :  { %12 = vsyncpa [#allocation3 + $0x1], 0 }
   0x4   :  { %13 = vsyncpa [#allocation6], 0 }
   0x5   :  { %14 = vsyncpa [#allocation4], 0 }
   0x6   :  { %16 = vsyncpa [#allocation4 + $0x1], 0 }
   0x7   :  { %17 = vsyncpa [#allocation9], 0 }
   0x8   :  { %19 = vsyncpa [#allocation9 + $0x1], 0  ;;  %s1147_s15 = smov 0   ;;  %s1149_s16 = smov 0  }
   0x9   :  { %s1151_s17 = smov 0   ;;  %s1153_s18 = smov 0  }
   0xa   :  { %s1155_s19 = smov 0   ;;  %s1157_s20 = smov 0  }
   0xb LB: > { %s1178_s21 = sadd.s32 4294967295, %s1110_s20   ;;  %s1404_s22 = sadd.s32 4294967294, %s1110_s20   ;;  %s1110_s20 = sphi %s1157_s20, %s25_s20   ;;  %s1106_s19 = sphi %s1155_s19, %s1428_s19   ;;  %s1102_s18 = sphi %s1153_s18, %s1427_s18   ;;  %s1098_s17 = sphi %s1151_s17, %s1426_s17   ;;  %s1094_s16 = sphi %s1149_s16, %s1425_s16   ;;  %s1090_s15 = sphi %s1147_s15, %s1424_s15  }
   0xc   : > { %p59_p0 = scmp.ne.s32.totalorder %s1094_s16, %s1090_s15  ;;  %p1405_p1 = scmp.eq.s32.totalorder %s1178_s21, 0 }
   0xd   : > { %p112_p3 = scmp.eq.s32.totalorder %s1404_s22, 1  ;;  %p724_p5 = scmp.ge.s32.totalorder %s1110_s20, 1 }
   0xe   : > { %p1189_p4 = por %p1405_p1, %p59_p0  ;;  %p175_p7 = scmp.lt.s32.totalorder %s1110_s20, 3 }
   0xf   : > { %p1194_p6 = por %p112_p3, %p59_p0  ;;  %s1112_s26 = smov [#allocation5]  }
  0x10   : > { %p1199_p8 = pnand %p724_p5, %p175_p7  ;;  %s187_s27 = sshll.u32 %s1112_s26, 4  ;;  %s188_s27 = int_to_ptr.vmem [resolvable:$true] %s187_s27 }
  0x11   : > { %s1409_s24 = scalar_select %p1194_p6, 1, 0 }
  0x12   : > { %p808_p9 = pneg %p1199_p8  ;;  %s37_s29 = sadd.s32 1, %s1106_s19 }
  0x13   : > { %s927_s30 = scalar_lea.vmem %s188_s27, 3072  ;;  %p935_p5 = scmp.lt.s32.totalorder %s188_s27, %s188_s27 }
  0x14   : > { %p1208_p11 = pnand %p808_p9, %p1405_p1  ;;  %p928_p13 = scmp.ne.s32.totalorder %s188_s27, %s927_s30 }
  0x15   : > { %p936_p7 = scmp.lt.s32.totalorder %s927_s30, %s927_s30 }
  0x16   : > { %p918_p12 = pneg %p1208_p11 }
  0x17   : > { %p937_p2 = por %p936_p7, %p935_p5 }
  0x18   : > { %p930_p0 = pnand %p928_p13, %p918_p12 }
  0x1a   : > { %p931_p3 = pneg %p930_p0 }
  0x1c   : > { %p938_p6 = pnand %p937_p2, %p931_p3 }
  0x1e   : > { %941 = shalt.err (!%p938_p6)
}
  0x1f   : > { %s1113_s5 = smov 192   ;;  %s1114_s6 = smov 12  }
  0x20   : > { %s1412_s1 = sld [smem:[#allocation15_spill]]  ;;  %p39_p2 = scmp.ge.s32.totalorder %s37_s29, 2 }
  0x21   : > { %s46_s9 = sadd.s32 1, %s1098_s17  ;;  %p53_p6 = scmp.ne.s32.totalorder %s1098_s17, %s1094_s16 }
  0x22   : > { %p54_p9 = scmp.eq.s32.totalorder %s1110_s20, 0  ;;  %s1430_s29 = smov (%p39_p2, %s37_s29), 0 }
  0x23   : > { %p1414_p13 = scmp.eq.s32.totalorder %s1178_s21, 1  ;;  %s41_s12 = ssub.s32 %s1106_s19, %s1430_s29 }
  0x24   : > { %p1226_p12 = por %p54_p9, %p53_p6  ;;  %p827_p3 = scmp.lt.s32.totalorder %s1110_s20, 2 }
  0x25   : > { %p1232_p0 = por %p1414_p13, %p53_p6  ;;  %s201_s13 = sand.u32 1, %s1098_s17  }
  0x26   : > { %811 = dma.hbm_to_vmem [thread:$0]  (!%p1208_p11), %s1412_s1, 3072, %s188_s27, [#allocation6], %s1113_s5, %s1113_s5, %s1114_s6  }
  0x27   : > { %p44_p11 = scmp.eq.s32.totalorder %s41_s12, 0  ;;  %s727_s14 = sshll.u32 %s201_s13, 2 }
  0x28   : > { %s728_s27 = sshll.u32 %s1106_s19, 6  ;;  %s205_s6 = scalar_lea.vmem [#allocation2], %s727_s14 }
  0x29   : > { %s1241_s26 = scalar_select %p44_p11, %s1098_s17, %s46_s9  }
  0x2a   : > { %s211_s5 = scalar_lea.hbm %s1399_s0, %s728_s27  ;;  %s213_s7 = sshll.u32 %s205_s6, 4  ;;  %s214_s7 = int_to_ptr.vmem [resolvable:$true] %s213_s7 }
  0x2b   : > { %p1249_p5 = pnand %p827_p3, %p1226_p12  ;;  %s202_s22 = scalar_lea.sflag [#allocation3], %s201_s13 }
  0x2c   : > { %s955_s12 = scalar_lea.vmem %s214_s7, 64  ;;  %s1115_s9 = smov [#allocation2]  }
  0x2d   : > { %p944_p7 = pneg %p1249_p5  ;;  %p956_p2 = scmp.ne.s32.totalorder %s214_s7, %s955_s12 }
  0x2e   : > { %s960_s1 = sshll.u32 %s1115_s9, 4  ;;  %s961_s1 = int_to_ptr.vmem [resolvable:$false] %s960_s1 }
  0x2f   : > { %p958_p6 = pnand %p956_p2, %p944_p7  ;;  %s962_s27 = scalar_lea.vmem %s961_s1, 128 }
  0x30   : > { %p963_p13 = scmp.lt.s32.totalorder %s214_s7, %s961_s1  ;;  %p964_p11 = scmp.lt.s32.totalorder %s962_s27, %s955_s12 }
  0x31   : > { %p959_p9 = pneg %p958_p6 }
  0x32   : > { %p965_p10 = por %p964_p11, %p963_p13 }
  0x34   : > { %p966_p1 = pnand %p965_p10, %p959_p9 }
  0x36   : > { %969 = shalt.err (!%p966_p1)
}
  0x37   : > { %815 = dma.hbm_to_vmem [thread:$0]  (!%p1249_p5), %s211_s5, 64, %s214_s7, %s202_s22  }
  0x38   : > { %222 = sbr.rel (%p1199_p8) target bundleno = 357 (0x165), region = 28  ;;  %s1260_s10 = sand.u32 (!%p1199_p8), 1, %s1094_s16  }
  0x39   : > { %s1263_s13 = sshll.u32 (!%p1199_p8), %s1260_s10, 2  ;;  %s225_s1 = scalar_lea.sflag (!%p1199_p8), [#allocation3], %s1260_s10 }
  0x3a   : > { %s228_s14 = scalar_lea.vmem (!%p1199_p8), [#allocation2], %s1263_s13 }
  0x3d   : > { %1073 = dma.done.wait (%p1189_p4), %s225_s1, 64  }
  0x3e   : > { %1075 = vsyncadd (%p1189_p4), %s225_s1, 4294967232  ;;  %p1417_p1 = scmp.eq.s32.totalorder %s1178_s21, 0 }
  0x40   : > { %1077 = dma.done.wait (%p1417_p1), [#allocation6], 3072   ;;  %p1418_p8 = pmov %p1417_p1 }
  0x41   : > { %v1116_v0 = vmov 0.0   ;;  %vm1117_vm0 = vmmov 0   ;;  %v1118_v1 = vmov 0   ;;  %v884_v2 = vld [vmem:[#allocation5 + $0xac] ss:$12 sps:$4 sm:$0xff]   ;;  %s762_s23 = sshll.u32 %s1102_s18, 6 }
  0x42   : > { %1079 = vsyncadd (%p1418_p8), [#allocation6], 4294964224  ;;  %776 = vmatprep.subr.bf16.mxu1 %v1116_v0  ;;  %792 = vmatprep.mubr.msk.bf16.mxu1 %vm1117_vm0, %v1116_v0  ;;  %v886_v3 = vld [vmem:[#allocation5 + $0xb0] ss:$12 sps:$4 sm:$0xff]   ;;  %v887_v4 = vld [vmem:[#allocation5 + $0xa8] ss:$12 sps:$4 sm:$0xff]   ;;  %s1287_s9 = scalar_lea.hbm %s1401_s2, %s762_s23  ;;  %s1294_s1 = scalar_lea.hbm %s1402_s3, %s762_s23 }
  0x43   : > { %461 = vmatprep.mubr.bf16.mxu0 %v1118_v1  ;;  %429 = vmatprep.subr.bf16.mxu0 %v884_v2  ;;  %v888_v5 = vld [vmem:[#allocation5 + $0x94] ss:$12 sps:$4 sm:$0xff]   ;;  %v890_v6 = vld [vmem:[#allocation5 + $0x98] ss:$12 sps:$4 sm:$0xff]   ;;  %v891_v7 = vld [vmem:[#allocation5 + $0x90] ss:$12 sps:$4 sm:$0xff]   ;;  %s1301_s12 = scalar_lea.hbm %s1403_s4, %s762_s23 }
  0x44   : > { %777 = vmatpush3.bf16.msra.mxu1 %v886_v3  ;;  %430 = vmatpush1.bf16.msra.mxu0 %v887_v4  ;;  %v892_v8 = vld [vmem:[#allocation5 + $0x7c] ss:$12 sps:$4 sm:$0xff]   ;;  %v894_v9 = vld [vmem:[#allocation5 + $0x80] ss:$12 sps:$4 sm:$0xff]   ;;  %v895_v10 = vld [vmem:[#allocation5 + $0x78] ss:$12 sps:$4 sm:$0xff]  }
  0x45   : > { %778 = vmatprep.subr.bf16.mxu1 %v1116_v0  ;;  %431 = vmatprep.subr.bf16.mxu0 %v888_v5  ;;  %v896_v11 = vld [vmem:[#allocation5 + $0x64] ss:$12 sps:$4 sm:$0xff]   ;;  %v898_v12 = vld [vmem:[#allocation5 + $0x68] ss:$12 sps:$4 sm:$0xff]   ;;  %v899_v13 = vld [vmem:[#allocation5 + $0x60] ss:$12 sps:$4 sm:$0xff]  }
  0x46   : > { %v900_v14 = vld [vmem:[#allocation5 + $0x4c] ss:$12 sps:$4 sm:$0xff]   ;;  %v902_v15 = vld [vmem:[#allocation5 + $0x50] ss:$12 sps:$4 sm:$0xff]   ;;  %v903_v16 = vld [vmem:[#allocation5 + $0x48] ss:$12 sps:$4 sm:$0xff]  }
  0x47   : > { %v904_v17 = vld [vmem:[#allocation5 + $0x34] ss:$12 sps:$4 sm:$0xff]   ;;  %v906_v18 = vld [vmem:[#allocation5 + $0x38] ss:$12 sps:$4 sm:$0xff]   ;;  %v907_v19 = vld [vmem:[#allocation5 + $0x30] ss:$12 sps:$4 sm:$0xff]  }
  0x48   : > { %779 = vmatpush3.bf16.msra.mxu1 %v890_v6  ;;  %432 = vmatpush1.bf16.msra.mxu0 %v891_v7  ;;  %v908_v20 = vld [vmem:[#allocation5 + $0x1c] ss:$12 sps:$4 sm:$0xff]   ;;  %v910_v21 = vld [vmem:[#allocation5 + $0x20] ss:$12 sps:$4 sm:$0xff]   ;;  %v911_v22 = vld [vmem:[#allocation5 + $0x18] ss:$12 sps:$4 sm:$0xff]  }
  0x49   : > { %780 = vmatprep.subr.bf16.mxu1 %v1116_v0  ;;  %433 = vmatprep.subr.bf16.mxu0 %v892_v8  ;;  %v912_v23 = vld [vmem:[#allocation5 + $0x4] ss:$12 sps:$4 sm:$0xff]   ;;  %v914_v24 = vld [vmem:[#allocation5 + $0x8] ss:$12 sps:$4 sm:$0xff]   ;;  %v915_v25 = vld [vmem:[#allocation5] ss:$12 sps:$4 sm:$0xff]  }
  0x4a   : > { %v268_v26 = vld [vmem:[%s228_s14] sm:$0xf]  ;;  %s252_s25 = scalar_lea.vmem [#allocation7], %s1263_s13  ;;  %s266_s30 = scalar_lea.vmem [#allocation10], %s1263_s13 }
  0x4b   : > { %s541_s28 = sshll.u32 %s252_s25, 4  ;;  %s569_s5 = sshll.u32 %s266_s30, 4  ;;  %s1289_s28 = int_to_ptr.vmem [resolvable:$true] %s541_s28  ;;  %s1303_s5 = int_to_ptr.vmem [resolvable:$true] %s569_s5 }
  0x4c   : > { %781 = vmatpush3.bf16.msra.mxu1 %v894_v9  ;;  %434 = vmatpush1.bf16.msra.mxu0 %v895_v10  ;;  %s1406_s6 = scalar_lea.vmem [#allocation8], %s1263_s13  ;;  %s970_s22 = scalar_lea.vmem %s1289_s28, 64 }
  0x4d   : > { %782 = vmatprep.subr.bf16.mxu1 %v1116_v0  ;;  %435 = vmatprep.subr.bf16.mxu0 %v896_v11  ;;  %s555_s7 = sshll.u32 %s1406_s6, 4  ;;  %p971_p4 = scmp.ne.s32.totalorder %s1289_s28, %s970_s22  ;;  %s1296_s7 = int_to_ptr.vmem [resolvable:$true] %s555_s7 }
  0x4e   : > { %s1119_s18 = smov [#allocation7]  }
  0x4f   : > { %p972_p10 = pnand %p971_p4, %p1232_p0  ;;  %s974_s27 = sshll.u32 %s1119_s18, 4  ;;  %s975_s27 = int_to_ptr.vmem [resolvable:$false] %s974_s27 }
  0x50   : > { %783 = vmatpush3.bf16.msra.mxu1 %v898_v12  ;;  %436 = vmatpush1.bf16.msra.mxu0 %v899_v13  ;;  %p977_p3 = scmp.lt.s32.totalorder %s1289_s28, %s975_s27 }
  0x51   : > { %784 = vmatprep.subr.bf16.mxu1 %v1116_v0  ;;  %437 = vmatprep.subr.bf16.mxu0 %v900_v14  ;;  %p973_p12 = pneg %p972_p10 }
  0x54   : > { %785 = vmatpush3.bf16.msra.mxu1 %v902_v15  ;;  %438 = vmatpush1.bf16.msra.mxu0 %v903_v16 }
  0x55   : > { %786 = vmatprep.subr.bf16.mxu1 %v1116_v0  ;;  %439 = vmatprep.subr.bf16.mxu0 %v904_v17 }
  0x58   : > { %787 = vmatpush3.bf16.msra.mxu1 %v906_v18  ;;  %440 = vmatpush1.bf16.msra.mxu0 %v907_v19 }
  0x59   : > { %788 = vmatprep.subr.bf16.mxu1 %v1116_v0  ;;  %441 = vmatprep.subr.bf16.mxu0 %v908_v20 }
  0x5c   : > { %789 = vmatpush3.bf16.msra.mxu1 %v910_v21  ;;  %442 = vmatpush1.bf16.msra.mxu0 %v911_v22 }
  0x5d   : > { %790 = vmatprep.subr.bf16.mxu1 %v1116_v0  ;;  %443 = vmatprep.subr.bf16.mxu0 %v912_v23 }
  0x60   : > { %791 = vmatpush3.bf16.msra.mxu1 %v914_v24  ;;  %444 = vmatpush1.bf16.msra.mxu0 %v915_v25 }
  0x63   : > { %793 = vmatmul.mubr.bf16.vlgmr.msra.gmra.mxu1 %v268_v26  ;;  %462 = vmatmul.mubr.bf16.vlgmr.msra.gmra.mxu0 %v268_v26 }
 0x123   : > { %v504_v27 = vpop.f32.mrf.mxu1  ;;  %v463_v29 = vpop.f32.mrf.mxu0 }
 0x124   : > { %v514_v28 = vpack.c.bf16 %v504_v27, %v504_v27  ;;  %v510_v30 = vpack.c.bf16 %v463_v29, %v463_v29 }
 0x125   : > { %v794_v31 = vpop.f32.mrf.mxu1  ;;  %v465_v32 = vpop.f32.mrf.mxu0 }
 0x126   : > { %515 = vst [vmem:[%s266_s30] sm:$0xf] %v514_v28  ;;  %511 = vst [vmem:[%s252_s25] sm:$0xf] %v510_v30  ;;  %v512_v33 = vpack.c.bf16 %v465_v32, %v465_v32  ;;  %s517_s30 = scalar_lea.sflag [#allocation4], %s1260_s10  ;;  %s976_s25 = scalar_lea.vmem %s975_s27, 128 }
 0x127   : > { %v507_v34 = vpop.f32.mrf.mxu1  ;;  %v467_v35 = vpop.f32.mrf.mxu0  ;;  %p978_p5 = scmp.lt.s32.totalorder %s976_s25, %s970_s22 }
 0x129   : > { %p979_p7 = por %p978_p5, %p977_p3 }
 0x12b   : > { %p980_p2 = pnand %p979_p7, %p973_p12 }
 0x12d   : > { %983 = shalt.err (!%p980_p2)
}
 0x12e   : > { %s984_s23 = scalar_lea.hbm %s1287_s9, 64  ;;  %s988_s8 = scalar_lea.hbm %s1401_s2, 128 }
 0x12f   : > { %p985_p6 = scmp.ne.s32.totalorder %s1287_s9, %s984_s23  ;;  %p989_p11 = scmp.lt.s32.totalorder %s1287_s9, %s1401_s2 }
 0x130   : > { %p990_p1 = scmp.lt.s32.totalorder %s988_s8, %s984_s23 }
 0x131   : > { %p986_p9 = pnand %p985_p6, %p1232_p0 }
 0x132   : > { %p991_p8 = por %p990_p1, %p989_p11 }
 0x133   : > { %p987_p13 = pneg %p986_p9 }
 0x135   : > { %p992_p4 = pnand %p991_p8, %p987_p13 }
 0x137   : > { %995 = shalt.err (!%p992_p4)
}
 0x138   : > { %802 = dma.vmem_to_hbm [thread:$0]  (%p1232_p0), %s1289_s28, 64, %s1287_s9, %s517_s30   ;;  %v795_v36 = vpop.f32.mrf.mxu1  ;;  %v468_v37 = vpop.f32.mrf.mxu0 }
 0x139   : > { %s1419_s22 = scalar_lea.vmem [#allocation8], %s1263_s13  ;;  %s1420_s6 = sand.u32 1, %s1178_s21  }
 0x13a   : > { %513 = vst [vmem:[%s1419_s22] sm:$0xf] %v512_v33  ;;  %s1330_s27 = scalar_lea.sflag [#allocation9], %s1420_s6  ;;  %s996_s25 = scalar_lea.vmem %s1296_s7, 64 }
 0x13b   : > { %p997_p10 = scmp.ne.s32.totalorder %s1296_s7, %s996_s25  ;;  %s1120_s23 = smov [#allocation8]  }
 0x13c   : > { %s1000_s10 = sshll.u32 %s1120_s23, 4  ;;  %s1001_s10 = int_to_ptr.vmem [resolvable:$false] %s1000_s10 }
 0x13d   : > { %p998_p12 = pnand %p997_p10, %p1232_p0  ;;  %s1002_s14 = scalar_lea.vmem %s1001_s10, 128 }
 0x13e   : > { %p1003_p5 = scmp.lt.s32.totalorder %s1296_s7, %s1001_s10  ;;  %p1004_p7 = scmp.lt.s32.totalorder %s1002_s14, %s996_s25 }
 0x13f   : > { %p999_p3 = pneg %p998_p12 }
 0x140   : > { %p1005_p2 = por %p1004_p7, %p1003_p5 }
 0x142   : > { %p1006_p6 = pnand %p1005_p2, %p999_p3 }
 0x144   : > { %1009 = shalt.err (!%p1006_p6)
}
 0x145   : > { %s1010_s21 = scalar_lea.hbm %s1294_s1, 64  ;;  %s1014_s9 = scalar_lea.hbm %s1402_s3, 128 }
 0x146   : > { %p1011_p9 = scmp.ne.s32.totalorder %s1294_s1, %s1010_s21  ;;  %p1015_p1 = scmp.lt.s32.totalorder %s1294_s1, %s1402_s3 }
 0x147   : > { %p1016_p8 = scmp.lt.s32.totalorder %s1014_s9, %s1010_s21 }
 0x148   : > { %p1012_p13 = pnand %p1011_p9, %p1232_p0 }
 0x149   : > { %p1017_p4 = por %p1016_p8, %p1015_p1 }
 0x14a   : > { %p1013_p11 = pneg %p1012_p13 }
 0x14c   : > { %p1018_p10 = pnand %p1017_p4, %p1013_p11 }
 0x14e   : > { %1021 = shalt.err (!%p1018_p10)
}
 0x14f   : > { %803 = dma.vmem_to_hbm [thread:$0]  (%p1232_p0), %s1296_s7, 64, %s1294_s1, %s1330_s27  }
 0x150   : > { %s1022_s18 = scalar_lea.vmem %s1303_s5, 64  ;;  %s1121_s22 = smov [#allocation10]  }
 0x151   : > { %p1023_p12 = scmp.ne.s32.totalorder %s1303_s5, %s1022_s18  ;;  %s1026_s6 = sshll.u32 %s1121_s22, 4  ;;  %s1027_s6 = int_to_ptr.vmem [resolvable:$false] %s1026_s6 }
 0x152   : > { %s1028_s25 = scalar_lea.vmem %s1027_s6, 128  ;;  %p1029_p7 = scmp.lt.s32.totalorder %s1303_s5, %s1027_s6 }
 0x153   : > { %p1024_p3 = pnand %p1023_p12, %p1232_p0  ;;  %p1030_p2 = scmp.lt.s32.totalorder %s1028_s25, %s1022_s18 }
 0x155   : > { %p1025_p5 = pneg %p1024_p3  ;;  %p1031_p6 = por %p1030_p2, %p1029_p7 }
 0x157   : > { %p1032_p9 = pnand %p1031_p6, %p1025_p5 }
 0x159   : > { %1035 = shalt.err (!%p1032_p9)
}
 0x15a   : > { %s1036_s23 = scalar_lea.hbm %s1301_s12, 64  ;;  %s1040_s10 = scalar_lea.hbm %s1403_s4, 128 }
 0x15b   : > { %p1037_p13 = scmp.ne.s32.totalorder %s1301_s12, %s1036_s23  ;;  %p1041_p8 = scmp.lt.s32.totalorder %s1301_s12, %s1403_s4 }
 0x15c   : > { %p1042_p4 = scmp.lt.s32.totalorder %s1040_s10, %s1036_s23 }
 0x15d   : > { %p1038_p11 = pnand %p1037_p13, %p1232_p0 }
 0x15e   : > { %p1043_p10 = por %p1042_p4, %p1041_p8 }
 0x15f   : > { %p1039_p1 = pneg %p1038_p11 }
 0x161   : > { %p1044_p12 = pnand %p1043_p10, %p1039_p1 }
 0x163   : > { %1047 = shalt.err (!%p1044_p12)
}
 0x164   : > { %804 = dma.vmem_to_hbm [thread:$0]  (%p1232_p0), %s1303_s5, 64, %s1301_s12, %s1330_s27  }
 0x165 PF: > { %s581_s13 = sand.u32 1, %s1090_s15   ;;  %p1421_p3 = scmp.ne.s32.totalorder %s1409_s24, 0 }
 0x166   : > { %p1422_p5 = scmp.ge.s32.totalorder %s1110_s20, 2  ;;  %s582_s28 = scalar_lea.sflag [#allocation4], %s581_s13 }
 0x168   : > { %p817_p7 = pnand %p1422_p5, %p1421_p3 }
 0x16a   : > { %p818_p2 = pneg %p817_p7 }
 0x16c   : > { %1081 = dma.done.wait (%p818_p2), %s582_s28, 64  }
 0x16d   : > { %1083 = vsyncadd (%p818_p2), %s582_s28, 4294967232  ;;  %s1423_s9 = sadd.s32 4294967294, %s1110_s20  }
 0x16e   : > { %s590_s30 = sand.u32 1, %s1423_s9  }
 0x16f   : > { %s591_s11 = scalar_lea.sflag [#allocation9], %s590_s30 }
 0x170   : > { %1085 = dma.done.wait (%p818_p2), %s591_s11, 128  }
 0x171   : > { %1087 = vsyncadd (%p818_p2), %s591_s11, 4294967168  ;;  %s25_s20 = sadd.s32 1, %s1110_s20   ;;  %s1424_s15 = smov %s1094_s16 }
 0x172   : > { %p22_p0 = scmp.ge.s32.totalorder %s25_s20, 4   ;;  %s1425_s16 = smov %s1098_s17 }
 0x173   : > { %s1426_s17 = smov %s1241_s26  ;;  %s1427_s18 = smov %s1106_s19 }
 0x174   : > { %s1428_s19 = smov %s1430_s29  ;;  %24 = sbr.rel (!%p22_p0) target bundleno = 11 (0xb), region = 109 }
 0x179   :  { %605 = vsyncpa [#allocation3], 1 }
 0x17a   :  { %607 = vsyncpa [#allocation3 + $0x1], 1 }
 0x17b   :  { %608 = vsyncpa [#allocation6], 1 }
 0x17c   :  { %609 = vsyncpa [#allocation4], 1 }
 0x17d   :  { %611 = vsyncpa [#allocation4 + $0x1], 1 }
 0x17e   :  { %612 = vsyncpa [#allocation9], 1 }
 0x17f   :  { %614 = vsyncpa [#allocation9 + $0x1], 1 }

</bundles_post_ra>
